<compile_context>
chip_gen: v5e
topology: v5e:2x2
jax: 0.10.0
libtpu: 0.0.40
codegen_flags: <defaults>
</compile_context>

<pallas_src>
import functools

import jax
import jax.numpy as jnp
from jax.experimental import pallas as pl
from jax.experimental.pallas import tpu as pltpu


def _round_up(x: int, m: int) -> int:
    return ((x + m - 1) // m) * m


def _hand_encoder_kernel(x_ref, o_ref, *, n_pass: int, n_yaw: int):
    """x_ref: (c_in, TILE_B), o_ref: (c_out, TILE_B); channels on sublanes."""
    x = x_ref[...]

    # Pass-through channels (position, or pose+position).
    o_ref[:n_pass, :] = x[:n_pass, :]

    # Contiguous pitch+yaw span -> one cos pass + one sin pass on the EUP.
    ang = x[n_pass:, :]
    if ang.dtype != jnp.float32:
        ang = ang.astype(jnp.float32)          # match torch fp32 trig numerics
    c = jnp.cos(ang).astype(o_ref.dtype)
    s = jnp.sin(ang).astype(o_ref.dtype)

    # cos(pitch), sin(pitch)
    o_ref[n_pass:n_pass + 1, :] = c[:1, :]
    o_ref[n_pass + 1:n_pass + 2, :] = s[:1, :]

    # cos(yaw), sin(yaw) -- only emitted if yaw is non-empty (static guard).
    if n_yaw > 0:
        o_ref[n_pass + 2:n_pass + 2 + n_yaw, :] = c[1:, :]
        o_ref[n_pass + 2 + n_yaw:, :] = s[1:, :]


def hand_encoder(x: jax.Array, use_pose: bool = False, *, tile_b: int = 1024) -> jax.Array:
    """Pallas implementation of HandEncoder.forward.

    x: any shape (B, ...); flattened to (B, C) like torch's .view(B, -1, 1, 1).
    Returns (B, C_out, 1, 1) to match the NCHW PyTorch output.
    """
    batch = x.shape[0]
    x2d = x.reshape(batch, -1)                 # glue reshape, plain JAX
    c_in = x2d.shape[1]

    n_pass = 16 if use_pose else 3             # channels copied through unchanged
    if c_in < n_pass + 1:
        raise ValueError(f"need at least {n_pass + 1} channels, got {c_in}")
    n_yaw = c_in - (n_pass + 1)
    c_out = n_pass + 2 * (1 + n_yaw)

    # Lane-dense layout: batch on the lane (last) axis, channels on sublanes.
    xt = x2d.T                                  # (c_in, B)

    # Pad batch to a lane-tile multiple; cos/sin over zero padding is harmless
    # and sliced off afterwards. This also handles remainder blocks.
    b_pad = _round_up(batch, 128)
    if b_pad <= tile_b:
        tile_b = b_pad                          # single grid step
    else:
        b_pad = _round_up(batch, tile_b)
    if b_pad != batch:
        xt = jnp.pad(xt, ((0, 0), (0, b_pad - batch)))

    kernel = functools.partial(_hand_encoder_kernel, n_pass=n_pass, n_yaw=n_yaw)

    out_t = pl.pallas_call(
        kernel,
        out_shape=jax.ShapeDtypeStruct((c_out, b_pad), x2d.dtype),
        grid=(b_pad // tile_b,),
        # sublane dim == full array dim, lane dim is a multiple of 128
        in_specs=[pl.BlockSpec((c_in, tile_b), lambda i: (0, i))],
        out_specs=pl.BlockSpec((c_out, tile_b), lambda i: (0, i)),
        compiler_params=pltpu.CompilerParams(
            dimension_semantics=("parallel",)),  # shard grid steps across TCs (v7x)
    )(xt)

    out2d = out_t[:, :batch].T                  # drop padding, back to (B, c_out)
    return out2d.reshape(batch, c_out, 1, 1)    # NCHW with H=W=1, like torch


def _reference(x: jax.Array, use_pose: bool = False) -> jax.Array:
    """Pure-JAX reference mirroring the PyTorch forward."""
    b = x.shape[0]
    x = x.reshape(b, -1, 1, 1)
    if use_pose:
        pose = x[:, :13]
        position = x[:, 13:16]
        pitch = x[:, 16:17]
        yaw = x[:, 17:]
        return jnp.concatenate(
            [pose, position, jnp.cos(pitch), jnp.sin(pitch),
             jnp.cos(yaw), jnp.sin(yaw)], axis=1)
    position = x[:, :3]
    pitch = x[:, 3:4]
    yaw = x[:, 4:]
    return jnp.concatenate(
        [position, jnp.cos(pitch), jnp.sin(pitch),
         jnp.cos(yaw), jnp.sin(yaw)], axis=1)


if __name__ == "__main__":
    key = jax.random.PRNGKey(0)
    k0, k1, k2 = jax.random.split(key, 3)

    # use_pose=False: 3 position + 1 pitch + 1 yaw = 5 channels -> 7 out
    x = jax.random.normal(k0, (2, 5, 1, 1), dtype=jnp.float32)
    out = jax.block_until_ready(hand_encoder(x, use_pose=False))
    ref = _reference(x, use_pose=False)
    assert out.shape == (2, 7, 1, 1), out.shape
    assert jnp.allclose(out, ref, atol=1e-6), "use_pose=False mismatch"

    # use_pose=True: 13 pose + 3 position + 1 pitch + 1 yaw = 18 channels -> 20 out
    xp = jax.random.normal(k1, (2, 18, 1, 1), dtype=jnp.float32)
    outp = jax.block_until_ready(hand_encoder(xp, use_pose=True))
    refp = _reference(xp, use_pose=True)
    assert outp.shape == (2, 20, 1, 1), outp.shape
    assert jnp.allclose(outp, refp, atol=1e-6), "use_pose=True mismatch"

    # non-multiple batch: exercises lane padding / tiled grid path
    xb = jax.random.normal(k2, (300, 7, 1, 1), dtype=jnp.float32)
    outb = jax.block_until_ready(hand_encoder(xb, use_pose=False))
    refb = _reference(xb, use_pose=False)
    assert outb.shape == (300, 11, 1, 1), outb.shape
    assert jnp.allclose(outb, refb, atol=1e-6), "padded-batch mismatch"

    print("KERNEL_OK")
</pallas_src>

<mosaic_0001>
module attributes {stable_mosaic.version = 11 : i64} {
  func.func @_hand_encoder_kernel(%arg0: i32, %arg1: memref<5x128xf32, #tpu.memory_space<vmem>>, %arg2: memref<7x128xf32, #tpu.memory_space<vmem>>) attributes {dimension_semantics = [#tpu.dimension_semantics<parallel>], iteration_bounds = array<i64: 1>, scalar_prefetch = 0 : i64, scratch_operands = 0 : i64, tpu.core_type = #tpu.core_type<tc>, window_params = [{transform_indices = @transform_0, window_bounds = array<i64: 5, 128>}, {transform_indices = @transform_1, window_bounds = array<i64: 7, 128>}]} {
    %c0 = arith.constant 0 : index
    %c0_0 = arith.constant 0 : index
    %0 = vector.load %arg1[%c0, %c0_0] : memref<5x128xf32, #tpu.memory_space<vmem>>, vector<5x128xf32>
    %1 = vector.extract_strided_slice %0 {offsets = [0, 0], sizes = [3, 128], strides = [1, 1]} : vector<5x128xf32> to vector<3x128xf32>
    %c0_1 = arith.constant 0 : index
    %c0_2 = arith.constant 0 : index
    %2 = vector.load %arg2[%c0_1, %c0_2] : memref<7x128xf32, #tpu.memory_space<vmem>>, vector<3x128xf32>
    tpu.vector_store %arg2[%c0_1, %c0_2], %1 {strides = array<i32>} : memref<7x128xf32, #tpu.memory_space<vmem>>, vector<3x128xf32>,
    %3 = vector.extract_strided_slice %0 {offsets = [3, 0], sizes = [2, 128], strides = [1, 1]} : vector<5x128xf32> to vector<2x128xf32>
    %4 = math.cos %3 : vector<2x128xf32>
    %5 = math.sin %3 : vector<2x128xf32>
    %6 = vector.extract_strided_slice %4 {offsets = [0, 0], sizes = [1, 128], strides = [1, 1]} : vector<2x128xf32> to vector<1x128xf32>
    %c3 = arith.constant 3 : index
    %c0_3 = arith.constant 0 : index
    %7 = vector.load %arg2[%c3, %c0_3] : memref<7x128xf32, #tpu.memory_space<vmem>>, vector<1x128xf32>
    tpu.vector_store %arg2[%c3, %c0_3], %6 {strides = array<i32>} : memref<7x128xf32, #tpu.memory_space<vmem>>, vector<1x128xf32>,
    %8 = vector.extract_strided_slice %5 {offsets = [0, 0], sizes = [1, 128], strides = [1, 1]} : vector<2x128xf32> to vector<1x128xf32>
    %c4 = arith.constant 4 : index
    %c0_4 = arith.constant 0 : index
    %9 = vector.load %arg2[%c4, %c0_4] : memref<7x128xf32, #tpu.memory_space<vmem>>, vector<1x128xf32>
    tpu.vector_store %arg2[%c4, %c0_4], %8 {strides = array<i32>} : memref<7x128xf32, #tpu.memory_space<vmem>>, vector<1x128xf32>,
    %10 = vector.extract_strided_slice %4 {offsets = [1, 0], sizes = [1, 128], strides = [1, 1]} : vector<2x128xf32> to vector<1x128xf32>
    %c5 = arith.constant 5 : index
    %c0_5 = arith.constant 0 : index
    %11 = vector.load %arg2[%c5, %c0_5] : memref<7x128xf32, #tpu.memory_space<vmem>>, vector<1x128xf32>
    tpu.vector_store %arg2[%c5, %c0_5], %10 {strides = array<i32>} : memref<7x128xf32, #tpu.memory_space<vmem>>, vector<1x128xf32>,
    %12 = vector.extract_strided_slice %5 {offsets = [1, 0], sizes = [1, 128], strides = [1, 1]} : vector<2x128xf32> to vector<1x128xf32>
    %c6 = arith.constant 6 : index
    %c0_6 = arith.constant 0 : index
    %13 = vector.load %arg2[%c6, %c0_6] : memref<7x128xf32, #tpu.memory_space<vmem>>, vector<1x128xf32>
    tpu.vector_store %arg2[%c6, %c0_6], %12 {strides = array<i32>} : memref<7x128xf32, #tpu.memory_space<vmem>>, vector<1x128xf32>,
    return
  }
  func.func @transform_0(%arg0: i32) -> (i32, i32) {
    %c0_i32 = arith.constant 0 : i32
    %c0_i32_0 = arith.constant 0 : i32
    return %c0_i32, %arg0 : i32, i32
  }
  func.func @transform_1(%arg0: i32) -> (i32, i32) {
    %c0_i32 = arith.constant 0 : i32
    %c0_i32_0 = arith.constant 0 : i32
    return %c0_i32, %arg0 : i32, i32
  }
}

</mosaic_0001>

<bundles_post_ra>
// kernel: tpu_custom_call.1
= control target key start
LH: loop header
LB: loop body
LE: loop exit
PB: predicated region body
PF: predicated region fallthrough
CT: control target
= control target key end

     0   :  { %6 = vsyncpa [#allocation3], 0  ;;  %s494_s0 = inlined_call_operand.hbm [shape: f32[5,128], index: 0, kind: input, shape index: {}]   ;;  %s495_s1 = inlined_call_operand.hbm [shape: f32[7,128], index: 1, kind: output, shape index: {}]  }
   0x1   :  { %7 = vsyncpa [#allocation4], 0  ;;  %s13_s8 = sshll.u32 %s494_s0, 4  ;;  %s422_s9 = smov [#allocation2]   ;;  %s14_s8 = int_to_ptr.hbm [resolvable:$true] %s13_s8 }
   0x2   :  { %s15_s10 = sshll.u32 %s422_s9, 4  ;;  %s16_s10 = int_to_ptr.vmem [resolvable:$true] %s15_s10 }
   0x3   :  { %18 = dma.hbm_to_vmem [thread:$0]  %s14_s8, 128, %s16_s10, [#allocation3]  }
   0x4   :  { %418 = dma.done.wait [#allocation3], 128  }
   0x5   :  { %419 = vsyncadd [#allocation3], 4294967168  ;;  %v444_v0 = vld [vmem:[#allocation2] sm:$0x1f]  ;;  %v423_v12 = vmov 683565275  }
   0x6   :  { %24 = vst [vmem:[#allocation5] sm:$0x7] %v444_v0  ;;  %v28_v1 = vand.u32 2139095040, %v444_v0  ;;  %v25_v3 = vand.u32 2147483647, %v444_v0  ;;  %vm27_vm12 = vcmp.lt.s32.totalorder %v444_v0, 0 }
   0x7   :  { %v424_v14 = vmov 2475754826   ;;  %v425_v16 = vmov 2131351028   ;;  %v426_v18 = vmov 2102212464  }
   0x8   :  { %v29_v2 = vshrl.u32 %v28_v1, 23  ;;  %v32_v6 = vand.u32 8388607, %v25_v3  ;;  %v427_v20 = vmov 920167782   ;;  %v429_v1 = vmov 0  }
   0x9   :  { %v428_v26 = vmov 1326507024   ;;  %vm26_vm13 = vcmp.le.f32.partialorder %v25_v3, 0.7853982  ;;  %s430_s0 = smov [#allocation5]   ;;  %s345_s14 = sshll.u32 %s495_s1, 4  ;;  %s346_s14 = int_to_ptr.hbm [resolvable:$true] %s345_s14 }
   0xa   :  { %v355_v4 = vadd.s32 4294967169, %v29_v2  ;;  %v33_v10 = vor.u32 8388608, %v32_v6  ;;  %s343_s11 = sshll.u32 %s430_s0, 4  ;;  %s344_s11 = int_to_ptr.vmem [resolvable:$true] %s343_s11 }
   0xc   :  { %v35_v5 = vadd.s32 1, %v355_v4  ;;  %v454_v28 = vshll.u32 %v33_v10, 8 }
   0xe   :  { %vm36_vm0 = vcmp.gt.s32.totalorder %v35_v5, 0  ;;  %v74_v40 = vand.u32 65535, %v454_v28  ;;  %v75_v41 = vshrl.u32 %v454_v28, 16 }
   0xf   :  { %v37_v7 = vsel %vm36_vm0, %v35_v5, 0 }
  0x10   :  { %v39_v8 = vand.u32 31, %v37_v7  ;;  %v451_v9 = vshrl.u32 %v37_v7, 5 }
  0x12   :  { %v40_v11 = vsub.s32 32, %v39_v8  ;;  %v42_v13 = vshll.u32 %v423_v12, %v39_v8  ;;  %v45_v15 = vshll.u32 %v424_v14, %v39_v8  ;;  %v48_v17 = vshll.u32 %v425_v16, %v39_v8 }
  0x13   :  { %v51_v19 = vshll.u32 %v426_v18, %v39_v8  ;;  %v54_v21 = vshll.u32 %v427_v20, %v39_v8  ;;  %vm57_vm1 = vcmp.lt.s32.totalorder %v451_v9, 1  ;;  %vm60_vm2 = vcmp.lt.s32.totalorder %v451_v9, 4 }
  0x14   :  { %v43_v22 = vshrl.u32 %v424_v14, %v40_v11  ;;  %v46_v23 = vshrl.u32 %v425_v16, %v40_v11  ;;  %v49_v24 = vshrl.u32 %v426_v18, %v40_v11  ;;  %v52_v25 = vshrl.u32 %v427_v20, %v40_v11 }
  0x15   :  { %v55_v27 = vshrl.u32 %v428_v26, %v40_v11  ;;  %vm59_vm3 = vcmp.lt.s32.totalorder %v451_v9, 3  ;;  %vm58_vm4 = vcmp.lt.s32.totalorder %v451_v9, 2  ;;  %v41_v48 = vshrl.u32 %v423_v12, %v40_v11 }
  0x16   :  { %v44_v29 = vor.u32 %v43_v22, %v42_v13  ;;  %v47_v30 = vor.u32 %v46_v23, %v45_v15  ;;  %v50_v31 = vor.u32 %v49_v24, %v48_v17  ;;  %v53_v32 = vor.u32 %v52_v25, %v51_v19 }
  0x17   :  { %v56_v33 = vor.u32 %v55_v27, %v54_v21 }
  0x18   :  { %v65_v34 = vsel %vm57_vm1, %v44_v29, %v47_v30  ;;  %v69_v35 = vsel %vm57_vm1, %v47_v30, %v50_v31  ;;  %v66_v36 = vsel %vm60_vm2, %v53_v32, 920167782  ;;  %v61_v61 = vsel %vm57_vm1, %v41_v48, %v44_v29 }
  0x19   :  { %v70_v37 = vsel %vm60_vm2, %v56_v33, 1326507024  ;;  %v67_v38 = vsel %vm59_vm3, %v50_v31, %v66_v36  ;;  %v62_v63 = vsel %vm60_vm2, %v50_v31, 2102212464 }
  0x1a   :  { %v71_v39 = vsel %vm59_vm3, %v53_v32, %v70_v37  ;;  %v68_v42 = vsel %vm58_vm4, %v65_v34, %v67_v38  ;;  %v63_v12 = vsel %vm59_vm3, %v47_v30, %v62_v63 }
  0x1b   :  { %v72_v43 = vsel %vm58_vm4, %v69_v35, %v71_v39  ;;  %v98_v46 = vand.u32 65535, %v68_v42  ;;  %v99_v47 = vshrl.u32 %v68_v42, 16  ;;  %v64_v20 = vsel %vm58_vm4, %v61_v61, %v63_v12 }
  0x1c   :  { %v76_v44 = vand.u32 65535, %v72_v43  ;;  %v77_v45 = vshrl.u32 %v72_v43, 16  ;;  %v118_v24 = vmul.u32 %v454_v28, %v64_v20  ;;  %vm168_vm4 = vweird.f32 %v444_v0 }
  0x1d   :  { %v100_v52 = vmul.u32 %v98_v46, %v74_v40  ;;  %v101_v53 = vmul.u32 %v99_v47, %v74_v40  ;;  %v102_v54 = vmul.u32 %v98_v46, %v75_v41  ;;  %v103_v58 = vmul.u32 %v99_v47, %v75_v41 }
  0x1e   :  { %v78_v49 = vmul.u32 %v76_v44, %v74_v40  ;;  %v79_v50 = vmul.u32 %v77_v45, %v74_v40  ;;  %v80_v51 = vmul.u32 %v76_v44, %v75_v41  ;;  %v81_v55 = vmul.u32 %v77_v45, %v75_v41 }
  0x1f   :  { %v104_v59 = vshll.u32 %v101_v53, 16  ;;  %v106_v60 = vshll.u32 %v102_v54, 16  ;;  %v105_v10 = vshrl.u32 %v101_v53, 16  ;;  %v107_v16 = vshrl.u32 %v102_v54, 16 }
  0x20   :  { %v82_v56 = vshll.u32 %v79_v50, 16  ;;  %v84_v57 = vshll.u32 %v80_v51, 16  ;;  %v83_v5 = vshrl.u32 %v79_v50, 16  ;;  %v85_v13 = vshrl.u32 %v80_v51, 16 }
  0x21   :  { %vm108_vm6 = vc.u32 %v100_v52, %v104_v59  ;;  %v110_v4 = vadd.s32 %v104_v59, %v100_v52 }
  0x22   :  { %vm86_vm5 = vc.u32 %v78_v49, %v82_v56  ;;  %v88_v62 = vadd.s32 %v82_v56, %v78_v49  ;;  %v109_v7 = vsel %vm108_vm6, 1, %v429_v1 }
  0x23   :  { %v87_v2 = vsel %vm86_vm5, 1, %v429_v1  ;;  %v111_v11 = vadd.s32 %v109_v7, %v103_v58  ;;  %vm112_vm8 = vc.u32 %v110_v4, %v106_v60  ;;  %v114_v19 = vadd.s32 %v110_v4, %v106_v60 }
  0x24   :  { %v89_v6 = vadd.s32 %v87_v2, %v81_v55  ;;  %vm90_vm7 = vc.u32 %v88_v62, %v84_v57  ;;  %v113_v15 = vsel %vm112_vm8, 1, %v429_v1 }
  0x25   :  { %v91_v8 = vsel %vm90_vm7, 1, %v429_v1  ;;  %v115_v17 = vadd.s32 %v113_v15, %v111_v11 }
  0x26   :  { %v93_v14 = vadd.s32 %v91_v8, %v89_v6 }
  0x27   :  { %v116_v21 = vadd.s32 %v115_v17, %v105_v10 }
  0x28   :  { %v94_v18 = vadd.s32 %v93_v14, %v83_v5 }
  0x29   :  { %v117_v23 = vadd.s32 %v116_v21, %v107_v16 }
  0x2a   :  { %v95_v22 = vadd.s32 %v94_v18, %v85_v13 }
  0x2b   :  { %v121_v25 = vadd.s32 1, %v117_v23 }
  0x2c   :  { %vm120_vm9 = vc.u32 %v95_v22, %v114_v19  ;;  %v119_v9 = vadd.s32 %v114_v19, %v95_v22 }
  0x2d   :  { %v122_v26 = vsel %vm120_vm9, %v121_v25, %v117_v23 }
  0x2e   :  { %v123_v27 = vadd.s32 %v122_v26, %v118_v24 }
  0x30   :  { %v124_v29 = vadd.s32 536870912, %v123_v27 }
  0x32   :  { %v125_v30 = vshrl.u32 %v124_v29, 30 }
  0x34   :  { %v126_v31 = vshll.u32 %v125_v30, 30  ;;  %v149_v48 = vsub.s32 4, %v125_v30 }
  0x36   :  { %v127_v32 = vsub.s32 %v123_v27, %v126_v31  ;;  %v150_v51 = vsel %vm27_vm12, %v149_v48, %v125_v30 }
  0x37   :  { %v152_v54 = vsel %vm26_vm13, 0, %v150_v51 }
  0x38   :  { %vm128_vm10 = vcmp.lt.s32.totalorder %v127_v32, 0  ;;  %v129_v33 = vsub.s32 0, %v127_v32  ;;  %v323_v59 = vadd.s32 3, %v152_v54  ;;  %v169_v1 = vand.u32 3, %v152_v54 }
  0x3a   :  { %v130_v34 = vsel %vm128_vm10, %v129_v33, %v127_v32  ;;  %v324_v2 = vand.u32 3, %v323_v59  ;;  %vm174_vm14 = vcmp.eq.s32.totalorder %v169_v1, 2  ;;  %vm170_vm0 = vcmp.lt.s32.totalorder %v169_v1, 2 }
  0x3b   :  { %v131_v35 = vclz %v130_v34  ;;  %vm171_vm1 = vcmp.eq.s32.totalorder %v169_v1, 0 }
  0x3c   :  { %vm329_vm15 = vcmp.eq.s32.totalorder %v324_v2, 2  ;;  %vm326_vm2 = vcmp.eq.s32.totalorder %v324_v2, 0  ;;  %vm325_vm3 = vcmp.lt.s32.totalorder %v324_v2, 2 }
  0x3d   :  { %v356_v36 = vadd.s32 4294967294, %v131_v35 }
  0x3f   :  { %vm357_vm11 = vcmp.lt.s32.totalorder %v356_v36, 0 }
  0x40   :  { %v134_v37 = vsel %vm357_vm11, 0, %v356_v36 }
  0x41   :  { %v135_v38 = vsub.s32 32, %v134_v37  ;;  %v136_v39 = vshll.u32 %v127_v32, %v134_v37  ;;  %v139_v40 = vsub.s32 4294967266, %v134_v37 }
  0x43   :  { %v137_v28 = vshrl.u32 %v119_v9, %v135_v38  ;;  %v140_v41 = vadd.s32 127, %v139_v40 }
  0x45   :  { %v138_v42 = vor.u32 %v137_v28, %v136_v39  ;;  %v141_v43 = vshll.u32 %v140_v41, 23 }
  0x47   :  { %v142_v44 = vor.u32 4788187, %v141_v43  ;;  %v145_v45 = vcvt.s32.f32 %v138_v42 }
  0x49   :  { %v143_v46 = vand.u32 2147483647, %v142_v44 }
  0x4b   :  { %v146_v47 = vmul.f32 %v145_v45, %v143_v46 }
  0x4d   :  { %v147_v49 = vxor.u32 2147483648, %v146_v47 }
  0x4f   :  { %v148_v50 = vsel %vm27_vm12, %v147_v49, %v146_v47 }
  0x50   :  { %v151_v52 = vsel %vm26_vm13, %v444_v0, %v148_v50 }
  0x51   :  { %v153_v53 = vmul.f32 %v151_v52, %v151_v52 }
  0x53   :  { %v154_v55 = vmul.f32 -0.001358992, %v153_v53  ;;  %v161_v56 = vmul.f32 -0.00019511016, %v153_v53 }
  0x55   :  { %v155_v57 = vadd.f32 0.041655596, %v154_v55  ;;  %v162_v58 = vadd.f32 0.008332121, %v161_v56 }
  0x57   :  { %v156_v60 = vmul.f32 %v155_v57, %v153_v53  ;;  %v163_v61 = vmul.f32 %v162_v58, %v153_v53 }
  0x59   :  { %v157_v62 = vadd.f32 -0.4999988, %v156_v60  ;;  %v164_v63 = vadd.f32 -0.16666654, %v163_v61 }
  0x5b   :  { %v158_v4 = vmul.f32 %v157_v62, %v153_v53  ;;  %v165_v3 = vmul.f32 %v164_v63, %v153_v53 }
  0x5d   :  { %v159_v5 = vadd.f32 1.0, %v158_v4  ;;  %v166_v6 = vadd.f32 1.0, %v165_v3 }
  0x5f   :  { %v167_v7 = vmul.f32 %v166_v6, %v151_v52  ;;  %v175_v8 = vxor.u32 2147483648, %v159_v5 }
  0x61   :  { %v172_v10 = vxor.u32 2147483648, %v167_v7  ;;  %v176_v11 = vsel %vm174_vm14, %v175_v8, %v167_v7  ;;  %v331_v12 = vsel %vm329_vm15, %v175_v8, %v167_v7 }
  0x63   :  { %v173_v13 = vsel %vm171_vm1, %v159_v5, %v172_v10  ;;  %v328_v14 = vsel %vm326_vm2, %v159_v5, %v172_v10 }
  0x64   :  { %v177_v15 = vsel %vm170_vm0, %v173_v13, %v176_v11  ;;  %v332_v16 = vsel %vm325_vm3, %v328_v14, %v331_v12 }
  0x65   :  { %v178_v17 = vsel %vm168_vm4, nan, %v177_v15  ;;  %v333_v18 = vsel %vm168_vm4, nan, %v332_v16 }
  0x66   :  { %334 = vst [vmem:[#allocation5] sm:$0x8] %v178_v17 }
  0x67   :  { %336 = vst [vmem:[#allocation5 + $0x1] sm:$0x10] %v178_v17 }
  0x68   :  { %335 = vst [vmem:[#allocation5 + $0x1] sm:$0x8] %v333_v18 }
  0x69   :  { %337 = vst [vmem:[#allocation5 + $0x2] sm:$0x10] %v333_v18 }
  0x6a   :  { %348 = dma.vmem_to_hbm [thread:$0]  %s344_s11, 128, %s346_s14, [#allocation4]  }
  0x6b   :  { %420 = dma.done.wait [#allocation4], 128  }
  0x6c   :  { %421 = vsyncadd [#allocation4], 4294967168 }
  0x6d   :  { %353 = vsyncpa [#allocation3], 1 }
  0x6e   :  { %354 = vsyncpa [#allocation4], 1 }

</bundles_post_ra>
